<compile_context>
chip_gen: v7x
topology: tpu7x:2x2x1
jax: 0.10.0
libtpu: 0.0.40
codegen_flags: <defaults>
</compile_context>

<pallas_src>
import functools

import jax
import jax.numpy as jnp
from jax import lax
from jax.experimental import pallas as pl
from jax.experimental.pallas import tpu as pltpu

DMODEL = 32
DFF = 2048
DFF_CHUNK = 512          # static in-kernel chunk of the hidden dimension
TM_TARGET = 512          # row-tile target (multiple of 8)
LN_EPS = 1e-5


def _round_up(a, b):
    return ((a + b - 1) // b) * b


def _epilogue_dtype():
    """bf16 bias/ReLU epilogue on bf16-capable VPUs (v6e/v7x); f32 elsewhere."""
    try:
        kind = jax.devices()[0].device_kind.lower()
    except Exception:
        kind = ""
    if "v6" in kind or "v7" in kind:
        return jnp.bfloat16
    return jnp.float32   # v5e and older: no native bf16 VPU -> keep f32


def ffn_kernel(x_ref, w1_ref, b1_ref, w2_ref, b2_ref, gamma_ref, beta_ref,
               o_ref, *, epi_dtype, dff_chunk):
    # x_ref: (tm, dmodel) f32 tile; w1/w2: whole bf16 weights resident in VMEM
    # (grid-invariant BlockSpecs); biases / LN params: (1, D) rows.
    x = x_ref[...]                        # f32, kept for residual + LayerNorm
    xb = x.astype(jnp.bfloat16)           # MXU LHS operand
    tm, dmodel = x.shape

    # DFF chunking: never materialize the full (tm, 2048) hidden activation.
    # Each chunk: h_c = epilogue(x @ W1[:, c]) ; y += h_c @ W2[c, :]
    def body(ci, y_acc):
        off = pl.multiple_of(ci * dff_chunk, dff_chunk)
        w1c = w1_ref[:, pl.ds(off, dff_chunk)]        # (dmodel, chunk) bf16
        b1c = b1_ref[:, pl.ds(off, dff_chunk)]        # (1, chunk) epi_dtype
        h = jnp.dot(xb, w1c, preferred_element_type=jnp.float32)
        # bias + ReLU + downcast in epi_dtype (bf16 on v6e/v7x, f32 on v5e)
        h = jnp.maximum(h.astype(epi_dtype) + b1c, 0).astype(jnp.bfloat16)
        w2c = w2_ref[pl.ds(off, dff_chunk), :]        # (chunk, dmodel) bf16
        return y_acc + jnp.dot(h, w2c, preferred_element_type=jnp.float32)

    y = lax.fori_loop(0, DFF // dff_chunk, body,
                      jnp.zeros((tm, dmodel), jnp.float32), unroll=True)
    y = y + b2_ref[...]

    # TODO(synk): dropout is identity here (eval-mode semantics); training-mode
    # stochastic masking would use pltpu.prng_seed / prng_random_bits.

    # Residual + LayerNorm over the last (dmodel) axis, all in f32.
    z = y + x
    mean = jnp.mean(z, axis=-1, keepdims=True)
    var = jnp.mean((z - mean) * (z - mean), axis=-1, keepdims=True)
    zn = (z - mean) * lax.rsqrt(var + LN_EPS)
    o_ref[...] = (zn * gamma_ref[...] + beta_ref[...]).astype(o_ref.dtype)


@jax.jit
def feed_forward_layer(x, w1, b1, w2, b2, gamma, beta):
    """x: (batch, seq, dmodel) -> (batch, seq, dmodel)."""
    batch, seq, dmodel = x.shape
    n = batch * seq
    x2 = x.reshape(n, dmodel)

    # Adaptive row tile: target TM_TARGET rows/step, but keep >= 2 grid steps
    # (v7x megacore sharding on the "parallel" axis) and avoid padding tiny
    # inputs up to the target tile.
    tm = min(TM_TARGET, max(8, _round_up(-(-n // 2), 8)))
    n_pad = _round_up(n, tm)
    if n_pad != n:
        x2 = jnp.pad(x2, ((0, n_pad - n), (0, 0)))

    epi_dtype = _epilogue_dtype()

    # bf16 weights for the MXU; b1 in the epilogue dtype; LN params / b2 f32.
    w1_b = w1.astype(jnp.bfloat16)
    w2_b = w2.astype(jnp.bfloat16)
    b1_2 = b1.reshape(1, DFF).astype(epi_dtype)
    b2_2 = b2.reshape(1, dmodel).astype(jnp.float32)
    g_2 = gamma.reshape(1, dmodel).astype(jnp.float32)
    be_2 = beta.reshape(1, dmodel).astype(jnp.float32)

    full = lambda i: (0, 0)   # grid-invariant operands: same whole block each step
    kernel = functools.partial(ffn_kernel, epi_dtype=epi_dtype,
                               dff_chunk=DFF_CHUNK)

    b1_bytes = b1_2.size * (2 if epi_dtype == jnp.bfloat16 else 4)
    cost = pl.CostEstimate(
        flops=2 * n_pad * dmodel * DFF * 2,
        transcendentals=n_pad,  # one rsqrt per row
        bytes_accessed=(x2.size * 4 * 2 + w1_b.size * 2 + w2_b.size * 2
                        + b1_bytes + (b2_2.size + g_2.size + be_2.size) * 4),
    )

    out2 = pl.pallas_call(
        kernel,
        out_shape=jax.ShapeDtypeStruct((n_pad, dmodel), x.dtype),
        grid_spec=pltpu.PrefetchScalarGridSpec(
            num_scalar_prefetch=0,
            grid=(n_pad // tm,),
            in_specs=[
                pl.BlockSpec((tm, dmodel), lambda i: (i, 0)),   # x row tile
                pl.BlockSpec((dmodel, DFF), full),              # W1 (bf16)
                pl.BlockSpec((1, DFF), full),                   # b1
                pl.BlockSpec((DFF, dmodel), full),              # W2 (bf16)
                pl.BlockSpec((1, dmodel), full),                # b2
                pl.BlockSpec((1, dmodel), full),                # gamma
                pl.BlockSpec((1, dmodel), full),                # beta
            ],
            out_specs=pl.BlockSpec((tm, dmodel), lambda i: (i, 0)),
        ),
        compiler_params=pltpu.CompilerParams(
            dimension_semantics=("parallel",),
        ),
        cost_estimate=cost,
    )(x2, w1_b, b1_2, w2_b, b2_2, g_2, be_2)

    return out2[:n].reshape(batch, seq, dmodel)


def reference(x, w1, b1, w2, b2, gamma, beta, epi_dtype):
    # Mirrors the kernel's numerics: bf16 MXU operands with f32 accumulation
    # and the bias+ReLU epilogue in epi_dtype.
    h = jnp.dot(x.astype(jnp.bfloat16), w1.astype(jnp.bfloat16),
                preferred_element_type=jnp.float32)
    h = jnp.maximum(h.astype(epi_dtype) + b1.astype(epi_dtype), 0)
    h = h.astype(jnp.bfloat16)
    y = jnp.dot(h, w2.astype(jnp.bfloat16),
                preferred_element_type=jnp.float32) + b2
    z = y + x
    mean = jnp.mean(z, axis=-1, keepdims=True)
    var = jnp.mean((z - mean) ** 2, axis=-1, keepdims=True)
    return (z - mean) / jnp.sqrt(var + LN_EPS) * gamma + beta


if __name__ == "__main__":
    key = jax.random.PRNGKey(0)
    k_x, k_w1, k_b1, k_w2, k_b2 = jax.random.split(key, 5)

    batch, seq = 2, 8
    x = jax.random.normal(k_x, (batch, seq, DMODEL), dtype=jnp.float32)

    # Deterministic parameter init (uniform, PyTorch-Linear-like scale).
    lim1 = 1.0 / (DMODEL ** 0.5)
    lim2 = 1.0 / (DFF ** 0.5)
    w1 = jax.random.uniform(k_w1, (DMODEL, DFF), jnp.float32, -lim1, lim1)
    b1 = jax.random.uniform(k_b1, (DFF,), jnp.float32, -lim1, lim1)
    w2 = jax.random.uniform(k_w2, (DFF, DMODEL), jnp.float32, -lim2, lim2)
    b2 = jax.random.uniform(k_b2, (DMODEL,), jnp.float32, -lim2, lim2)
    gamma = jnp.ones((DMODEL,), jnp.float32)
    beta = jnp.zeros((DMODEL,), jnp.float32)

    out = feed_forward_layer(x, w1, b1, w2, b2, gamma, beta)
    out = jax.block_until_ready(out)

    ref = reference(x, w1, b1, w2, b2, gamma, beta, _epilogue_dtype())
    assert out.shape == x.shape
    err = float(jnp.max(jnp.abs(out - ref)))
    assert jnp.allclose(out, ref, atol=2e-3, rtol=2e-3), err

    print("KERNEL_OK")
</pallas_src>

<mosaic_0001>
module attributes {stable_mosaic.version = 11 : i64} {
  func.func @ffn_kernel(%arg0: i32, %arg1: memref<8x32xf32, #tpu.memory_space<vmem>>, %arg2: memref<32x2048xbf16, #tpu.memory_space<vmem>>, %arg3: memref<1x2048xf32, #tpu.memory_space<vmem>>, %arg4: memref<2048x32xbf16, #tpu.memory_space<vmem>>, %arg5: memref<1x32xf32, #tpu.memory_space<vmem>>, %arg6: memref<1x32xf32, #tpu.memory_space<vmem>>, %arg7: memref<1x32xf32, #tpu.memory_space<vmem>>, %arg8: memref<8x32xf32, #tpu.memory_space<vmem>>) attributes {dimension_semantics = [#tpu.dimension_semantics<parallel>], iteration_bounds = array<i64: 2>, scalar_prefetch = 0 : i64, scratch_operands = 0 : i64, tpu.core_type = #tpu.core_type<tc>, window_params = [{transform_indices = @transform_0, window_bounds = array<i64: 8, 32>}, {pipeline_mode = #tpu.pipeline_mode<synchronous>, transform_indices = @transform_1, window_bounds = array<i64: 32, 2048>}, {pipeline_mode = #tpu.pipeline_mode<synchronous>, transform_indices = @transform_2, window_bounds = array<i64: 1, 2048>}, {pipeline_mode = #tpu.pipeline_mode<synchronous>, transform_indices = @transform_3, window_bounds = array<i64: 2048, 32>}, {pipeline_mode = #tpu.pipeline_mode<synchronous>, transform_indices = @transform_4, window_bounds = array<i64: 1, 32>}, {pipeline_mode = #tpu.pipeline_mode<synchronous>, transform_indices = @transform_5, window_bounds = array<i64: 1, 32>}, {pipeline_mode = #tpu.pipeline_mode<synchronous>, transform_indices = @transform_6, window_bounds = array<i64: 1, 32>}, {transform_indices = @transform_7, window_bounds = array<i64: 8, 32>}]} {
    %c0 = arith.constant 0 : index
    %c0_0 = arith.constant 0 : index
    %0 = vector.load %arg1[%c0, %c0_0] : memref<8x32xf32, #tpu.memory_space<vmem>>, vector<8x32xf32>
    %1 = arith.truncf %0 : vector<8x32xf32> to vector<8x32xbf16>
    %cst = arith.constant 0.000000e+00 : f32
    %2 = vector.broadcast %cst : f32 to vector<8x32xf32>
    %c0_i32 = arith.constant 0 : i32
    %c512_i32 = arith.constant 512 : i32
    %3 = arith.muli %c0_i32, %c512_i32 : i32
    %4 = tpu.assume_multiple %3, 512 : i32
    %c0_1 = arith.constant 0 : index
    %5 = arith.index_cast %4 : i32 to index
    %6 = vector.load %arg2[%c0_1, %5] : memref<32x2048xbf16, #tpu.memory_space<vmem>>, vector<32x512xbf16>
    %c0_2 = arith.constant 0 : index
    %7 = arith.index_cast %4 : i32 to index
    %8 = vector.load %arg3[%c0_2, %7] : memref<1x2048xf32, #tpu.memory_space<vmem>>, vector<1x512xf32>
    %cst_3 = arith.constant dense<0.000000e+00> : vector<8x512xf32>
    %9 = tpu.matmul %1, %6, %cst_3 {dimension_numbers = #tpu.dot_dimension_numbers<[1], [0], [0], [1], [0, 0, 1, 1], [], []>} : vector<8x32xbf16>, vector<32x512xbf16>, vector<8x512xf32> -> vector<8x512xf32>
    %10 = vector.broadcast %8 : vector<1x512xf32> to vector<8x512xf32>
    %11 = arith.addf %9, %10 : vector<8x512xf32>
    %cst_4 = arith.constant 0.000000e+00 : f32
    %12 = vector.broadcast %cst_4 : f32 to vector<8x512xf32>
    %13 = arith.maximumf %11, %12 : vector<8x512xf32>
    %14 = arith.truncf %13 : vector<8x512xf32> to vector<8x512xbf16>
    %15 = arith.index_cast %4 : i32 to index
    %c0_5 = arith.constant 0 : index
    %16 = vector.load %arg4[%15, %c0_5] : memref<2048x32xbf16, #tpu.memory_space<vmem>>, vector<512x32xbf16>
    %cst_6 = arith.constant dense<0.000000e+00> : vector<8x32xf32>
    %17 = tpu.matmul %14, %16, %cst_6 {dimension_numbers = #tpu.dot_dimension_numbers<[1], [0], [0], [1], [0, 0, 1, 1], [], []>} : vector<8x512xbf16>, vector<512x32xbf16>, vector<8x32xf32> -> vector<8x32xf32>
    %18 = arith.addf %2, %17 : vector<8x32xf32>
    %c1_i32 = arith.constant 1 : i32
    %c512_i32_7 = arith.constant 512 : i32
    %19 = arith.muli %c1_i32, %c512_i32_7 : i32
    %20 = tpu.assume_multiple %19, 512 : i32
    %c0_8 = arith.constant 0 : index
    %21 = arith.index_cast %20 : i32 to index
    %22 = vector.load %arg2[%c0_8, %21] : memref<32x2048xbf16, #tpu.memory_space<vmem>>, vector<32x512xbf16>
    %c0_9 = arith.constant 0 : index
    %23 = arith.index_cast %20 : i32 to index
    %24 = vector.load %arg3[%c0_9, %23] : memref<1x2048xf32, #tpu.memory_space<vmem>>, vector<1x512xf32>
    %cst_10 = arith.constant dense<0.000000e+00> : vector<8x512xf32>
    %25 = tpu.matmul %1, %22, %cst_10 {dimension_numbers = #tpu.dot_dimension_numbers<[1], [0], [0], [1], [0, 0, 1, 1], [], []>} : vector<8x32xbf16>, vector<32x512xbf16>, vector<8x512xf32> -> vector<8x512xf32>
    %26 = vector.broadcast %24 : vector<1x512xf32> to vector<8x512xf32>
    %27 = arith.addf %25, %26 : vector<8x512xf32>
    %cst_11 = arith.constant 0.000000e+00 : f32
    %28 = vector.broadcast %cst_11 : f32 to vector<8x512xf32>
    %29 = arith.maximumf %27, %28 : vector<8x512xf32>
    %30 = arith.truncf %29 : vector<8x512xf32> to vector<8x512xbf16>
    %31 = arith.index_cast %20 : i32 to index
    %c0_12 = arith.constant 0 : index
    %32 = vector.load %arg4[%31, %c0_12] : memref<2048x32xbf16, #tpu.memory_space<vmem>>, vector<512x32xbf16>
    %cst_13 = arith.constant dense<0.000000e+00> : vector<8x32xf32>
    %33 = tpu.matmul %30, %32, %cst_13 {dimension_numbers = #tpu.dot_dimension_numbers<[1], [0], [0], [1], [0, 0, 1, 1], [], []>} : vector<8x512xbf16>, vector<512x32xbf16>, vector<8x32xf32> -> vector<8x32xf32>
    %34 = arith.addf %18, %33 : vector<8x32xf32>
    %c2_i32 = arith.constant 2 : i32
    %c512_i32_14 = arith.constant 512 : i32
    %35 = arith.muli %c2_i32, %c512_i32_14 : i32
    %36 = tpu.assume_multiple %35, 512 : i32
    %c0_15 = arith.constant 0 : index
    %37 = arith.index_cast %36 : i32 to index
    %38 = vector.load %arg2[%c0_15, %37] : memref<32x2048xbf16, #tpu.memory_space<vmem>>, vector<32x512xbf16>
    %c0_16 = arith.constant 0 : index
    %39 = arith.index_cast %36 : i32 to index
    %40 = vector.load %arg3[%c0_16, %39] : memref<1x2048xf32, #tpu.memory_space<vmem>>, vector<1x512xf32>
    %cst_17 = arith.constant dense<0.000000e+00> : vector<8x512xf32>
    %41 = tpu.matmul %1, %38, %cst_17 {dimension_numbers = #tpu.dot_dimension_numbers<[1], [0], [0], [1], [0, 0, 1, 1], [], []>} : vector<8x32xbf16>, vector<32x512xbf16>, vector<8x512xf32> -> vector<8x512xf32>
    %42 = vector.broadcast %40 : vector<1x512xf32> to vector<8x512xf32>
    %43 = arith.addf %41, %42 : vector<8x512xf32>
    %cst_18 = arith.constant 0.000000e+00 : f32
    %44 = vector.broadcast %cst_18 : f32 to vector<8x512xf32>
    %45 = arith.maximumf %43, %44 : vector<8x512xf32>
    %46 = arith.truncf %45 : vector<8x512xf32> to vector<8x512xbf16>
    %47 = arith.index_cast %36 : i32 to index
    %c0_19 = arith.constant 0 : index
    %48 = vector.load %arg4[%47, %c0_19] : memref<2048x32xbf16, #tpu.memory_space<vmem>>, vector<512x32xbf16>
    %cst_20 = arith.constant dense<0.000000e+00> : vector<8x32xf32>
    %49 = tpu.matmul %46, %48, %cst_20 {dimension_numbers = #tpu.dot_dimension_numbers<[1], [0], [0], [1], [0, 0, 1, 1], [], []>} : vector<8x512xbf16>, vector<512x32xbf16>, vector<8x32xf32> -> vector<8x32xf32>
    %50 = arith.addf %34, %49 : vector<8x32xf32>
    %c3_i32 = arith.constant 3 : i32
    %c512_i32_21 = arith.constant 512 : i32
    %51 = arith.muli %c3_i32, %c512_i32_21 : i32
    %52 = tpu.assume_multiple %51, 512 : i32
    %c0_22 = arith.constant 0 : index
    %53 = arith.index_cast %52 : i32 to index
    %54 = vector.load %arg2[%c0_22, %53] : memref<32x2048xbf16, #tpu.memory_space<vmem>>, vector<32x512xbf16>
    %c0_23 = arith.constant 0 : index
    %55 = arith.index_cast %52 : i32 to index
    %56 = vector.load %arg3[%c0_23, %55] : memref<1x2048xf32, #tpu.memory_space<vmem>>, vector<1x512xf32>
    %cst_24 = arith.constant dense<0.000000e+00> : vector<8x512xf32>
    %57 = tpu.matmul %1, %54, %cst_24 {dimension_numbers = #tpu.dot_dimension_numbers<[1], [0], [0], [1], [0, 0, 1, 1], [], []>} : vector<8x32xbf16>, vector<32x512xbf16>, vector<8x512xf32> -> vector<8x512xf32>
    %58 = vector.broadcast %56 : vector<1x512xf32> to vector<8x512xf32>
    %59 = arith.addf %57, %58 : vector<8x512xf32>
    %cst_25 = arith.constant 0.000000e+00 : f32
    %60 = vector.broadcast %cst_25 : f32 to vector<8x512xf32>
    %61 = arith.maximumf %59, %60 : vector<8x512xf32>
    %62 = arith.truncf %61 : vector<8x512xf32> to vector<8x512xbf16>
    %63 = arith.index_cast %52 : i32 to index
    %c0_26 = arith.constant 0 : index
    %64 = vector.load %arg4[%63, %c0_26] : memref<2048x32xbf16, #tpu.memory_space<vmem>>, vector<512x32xbf16>
    %cst_27 = arith.constant dense<0.000000e+00> : vector<8x32xf32>
    %65 = tpu.matmul %62, %64, %cst_27 {dimension_numbers = #tpu.dot_dimension_numbers<[1], [0], [0], [1], [0, 0, 1, 1], [], []>} : vector<8x512xbf16>, vector<512x32xbf16>, vector<8x32xf32> -> vector<8x32xf32>
    %66 = arith.addf %50, %65 : vector<8x32xf32>
    %c4_i32 = arith.constant 4 : i32
    %c0_28 = arith.constant 0 : index
    %c0_29 = arith.constant 0 : index
    %67 = vector.load %arg5[%c0_28, %c0_29] : memref<1x32xf32, #tpu.memory_space<vmem>>, vector<1x32xf32>
    %68 = vector.broadcast %67 : vector<1x32xf32> to vector<8x32xf32>
    %69 = arith.addf %66, %68 : vector<8x32xf32>
    %70 = arith.addf %69, %0 : vector<8x32xf32>
    %cst_30 = arith.constant dense<0.000000e+00> : vector<8xf32>
    %71 = vector.multi_reduction <add>, %70, %cst_30 [1] : vector<8x32xf32> to vector<8xf32>
    %72 = vector.shape_cast %71 : vector<8xf32> to vector<8x1xf32>
    %cst_31 = arith.constant 3.200000e+01 : f32
    %73 = vector.broadcast %cst_31 : f32 to vector<8x1xf32>
    %74 = arith.divf %72, %73 : vector<8x1xf32>
    %75 = vector.broadcast %74 : vector<8x1xf32> to vector<8x32xf32>
    %76 = arith.subf %70, %75 : vector<8x32xf32>
    %77 = vector.broadcast %74 : vector<8x1xf32> to vector<8x32xf32>
    %78 = arith.subf %70, %77 : vector<8x32xf32>
    %79 = arith.mulf %76, %78 : vector<8x32xf32>
    %cst_32 = arith.constant dense<0.000000e+00> : vector<8xf32>
    %80 = vector.multi_reduction <add>, %79, %cst_32 [1] : vector<8x32xf32> to vector<8xf32>
    %81 = vector.shape_cast %80 : vector<8xf32> to vector<8x1xf32>
    %cst_33 = arith.constant 3.200000e+01 : f32
    %82 = vector.broadcast %cst_33 : f32 to vector<8x1xf32>
    %83 = arith.divf %81, %82 : vector<8x1xf32>
    %84 = vector.broadcast %74 : vector<8x1xf32> to vector<8x32xf32>
    %85 = arith.subf %70, %84 : vector<8x32xf32>
    %cst_34 = arith.constant 9.99999974E-6 : f32
    %86 = vector.broadcast %cst_34 : f32 to vector<8x1xf32>
    %87 = arith.addf %83, %86 : vector<8x1xf32>
    %88 = math.rsqrt %87 : vector<8x1xf32>
    %89 = vector.broadcast %88 : vector<8x1xf32> to vector<8x32xf32>
    %90 = arith.mulf %85, %89 : vector<8x32xf32>
    %c0_35 = arith.constant 0 : index
    %c0_36 = arith.constant 0 : index
    %91 = vector.load %arg6[%c0_35, %c0_36] : memref<1x32xf32, #tpu.memory_space<vmem>>, vector<1x32xf32>
    %92 = vector.broadcast %91 : vector<1x32xf32> to vector<8x32xf32>
    %93 = arith.mulf %90, %92 : vector<8x32xf32>
    %c0_37 = arith.constant 0 : index
    %c0_38 = arith.constant 0 : index
    %94 = vector.load %arg7[%c0_37, %c0_38] : memref<1x32xf32, #tpu.memory_space<vmem>>, vector<1x32xf32>
    %95 = vector.broadcast %94 : vector<1x32xf32> to vector<8x32xf32>
    %96 = arith.addf %93, %95 : vector<8x32xf32>
    %c0_39 = arith.constant 0 : index
    %c0_40 = arith.constant 0 : index
    %97 = vector.load %arg8[%c0_39, %c0_40] : memref<8x32xf32, #tpu.memory_space<vmem>>, vector<8x32xf32>
    tpu.vector_store %arg8[%c0_39, %c0_40], %96 {strides = array<i32>} : memref<8x32xf32, #tpu.memory_space<vmem>>, vector<8x32xf32>,
    return
  }
  func.func @transform_0(%arg0: i32) -> (i32, i32) {
    %c0_i32 = arith.constant 0 : i32
    %c0_i32_0 = arith.constant 0 : i32
    return %arg0, %c0_i32 : i32, i32
  }
  func.func @transform_1(%arg0: i32) -> (i32, i32) {
    %c0_i32 = arith.constant 0 : i32
    %c0_i32_0 = arith.constant 0 : i32
    %c0_i32_1 = arith.constant 0 : i32
    return %c0_i32, %c0_i32_0 : i32, i32
  }
  func.func @transform_2(%arg0: i32) -> (i32, i32) {
    %c0_i32 = arith.constant 0 : i32
    %c0_i32_0 = arith.constant 0 : i32
    %c0_i32_1 = arith.constant 0 : i32
    return %c0_i32, %c0_i32_0 : i32, i32
  }
  func.func @transform_3(%arg0: i32) -> (i32, i32) {
    %c0_i32 = arith.constant 0 : i32
    %c0_i32_0 = arith.constant 0 : i32
    %c0_i32_1 = arith.constant 0 : i32
    return %c0_i32, %c0_i32_0 : i32, i32
  }
  func.func @transform_4(%arg0: i32) -> (i32, i32) {
    %c0_i32 = arith.constant 0 : i32
    %c0_i32_0 = arith.constant 0 : i32
    %c0_i32_1 = arith.constant 0 : i32
    return %c0_i32, %c0_i32_0 : i32, i32
  }
  func.func @transform_5(%arg0: i32) -> (i32, i32) {
    %c0_i32 = arith.constant 0 : i32
    %c0_i32_0 = arith.constant 0 : i32
    %c0_i32_1 = arith.constant 0 : i32
    return %c0_i32, %c0_i32_0 : i32, i32
  }
  func.func @transform_6(%arg0: i32) -> (i32, i32) {
    %c0_i32 = arith.constant 0 : i32
    %c0_i32_0 = arith.constant 0 : i32
    %c0_i32_1 = arith.constant 0 : i32
    return %c0_i32, %c0_i32_0 : i32, i32
  }
  func.func @transform_7(%arg0: i32) -> (i32, i32) {
    %c0_i32 = arith.constant 0 : i32
    %c0_i32_0 = arith.constant 0 : i32
    return %arg0, %c0_i32 : i32, i32
  }
}

</mosaic_0001>

<bundles_post_ra>
// kernel: feed_forward_layer.1
= control target key start
LH: loop header
LB: loop body
LE: loop exit
PB: predicated region body
PF: predicated region fallthrough
CT: control target
= control target key end

     0   :  { %12 = vsyncpa [#allocation3], 0  ;;  %s3936_s0 = inlined_call_operand.vmem [shape: f32[16,32], index: 0, kind: input, shape index: {}]   ;;  %s3937_s1 = inlined_call_operand.vmem [shape: bf16[32,2048], index: 1, kind: input, shape index: {}]   ;;  %s3938_s2 = inlined_call_operand.vmem [shape: f32[1,2048], index: 2, kind: input, shape index: {}]   ;;  %s3939_s3 = inlined_call_operand.vmem [shape: bf16[2048,32], index: 3, kind: input, shape index: {}]   ;;  %s3940_s4 = inlined_call_operand.vmem [shape: f32[1,32], index: 4, kind: input, shape index: {}]   ;;  %s3941_s5 = inlined_call_operand.vmem [shape: f32[1,32], index: 5, kind: input, shape index: {}]   ;;  %s3942_s6 = inlined_call_operand.vmem [shape: f32[1,32], index: 6, kind: input, shape index: {}]   ;;  %s3943_s7 = inlined_call_operand.hbm [shape: f32[16,32], index: 7, kind: output, shape index: {}]  }
   0x1   :  { %14 = vsyncpa [#allocation3 + $0x1], 0  ;;  %s3242_s24 = smov 0   ;;  %s3244_s25 = smov 0  }
   0x2   :  { %s3246_s26 = smov 0   ;;  %s3248_s27 = smov 0  }
   0x3 LB: > { %s3263_s28 = sadd.s32 4294967295, %s3198_s27   ;;  %s2389_s29 = sadd.s32 4294967294, %s3198_s27   ;;  %s3198_s27 = sphi %s3248_s27, %s3949_s27   ;;  %s3194_s26 = sphi %s3246_s26, %s3948_s26   ;;  %s3190_s25 = sphi %s3244_s25, %s3947_s25   ;;  %s3186_s24 = sphi %s3242_s24, %s3946_s24  }
   0x4   : > { %s3267_s30 = sadd.s32 1, %s3198_s27   ;;  %s179_s8 = sadd.s32 1, %s3194_s26 }
   0x5   : > { %s176_s9 = ssub.s32 %s3198_s27, %s3267_s30  ;;  %p189_p0 = scmp.ne.s32.totalorder %s3194_s26, %s3190_s25 }
   0x6   : > { %p177_p1 = scmp.eq.s32.totalorder %s176_s9, 0  ;;  %p190_p2 = scmp.eq.s32.totalorder %s3263_s28, 1 }
   0x7   : > { %p195_p3 = scmp.ne.s32.totalorder %s3190_s25, %s3186_s24  ;;  %p196_p4 = scmp.eq.s32.totalorder %s2389_s29, 1 }
   0x8   : > { %s3278_s10 = scalar_select %p177_p1, %s3194_s26, %s179_s8  }
   0x9   : > { %p3280_p5 = por %p190_p2, %p189_p0  ;;  %p3284_p6 = por %p196_p4, %p195_p3 }
   0xa   : > { %p2392_p7 = scmp.ge.s32.totalorder %s3198_s27, 1  ;;  %p239_p8 = scmp.lt.s32.totalorder %s3198_s27, 3 }
   0xc   : > { %p240_p9 = pnand %p2392_p7, %p239_p8 }
   0xd   : > { %v277_v0 = vld [vmem:[%s3937_s1] sm:$0xff] (!%p240_p9)  ;;  %v278_v2 = vld [vmem:[%s3937_s1 + $0x8] sm:$0xff] (!%p240_p9)  ;;  %p270_p10 = scmp.lt.s32.totalorder (!%p240_p9), %s3263_s28, 1  ;;  %v3200_v8 = vmov (!%p240_p9), 0   ;;  %v2405_v14 = vld [vmem:[%s3937_s1 + $0x10] sm:$0xff] (!%p240_p9)  ;;  %vm347_vm0 = vcmask (!%p240_p9), 261120  }
   0xe   : > { %243 = sbr.rel (%p240_p9) target bundleno = 1294 (0x50e), region = 48  ;;  %v279_v1 = vld [vmem:[%s3937_s1 + $0x40] sm:$0xff] (!%p240_p9)  ;;  %v280_v4 = vld [vmem:[%s3937_s1 + $0x48] sm:$0xff] (!%p240_p9)  ;;  %383 = vmatprep.mubr.bf16.mxu0 (!%p240_p9), %v3200_v8  ;;  %424 = vmatprep.mubr.bf16.mxu1 (!%p240_p9), %v3200_v8  ;;  %v2407_v16 = vld [vmem:[%s3937_s1 + $0x50] sm:$0xff] (!%p240_p9)  ;;  %s267_s21 = sand.u32 (!%p240_p9), 1, %s3190_s25  }
   0xf   : > { %v2396_v3 = vcombine.high (!%p240_p9), %v277_v0, %v279_v1  ;;  %v2395_v5 = vcombine.low (!%p240_p9), %v277_v0, %v279_v1  ;;  %v281_v6 = vld [vmem:[%s3937_s1 + $0x80] sm:$0xff] (!%p240_p9)  ;;  %v2398_v9 = vcombine.high (!%p240_p9), %v278_v2, %v280_v4  ;;  %v2397_v10 = vcombine.low (!%p240_p9), %v278_v2, %v280_v4  ;;  %v282_v12 = vld [vmem:[%s3937_s1 + $0x88] sm:$0xff] (!%p240_p9)  ;;  %v2406_v17 = vld [vmem:[%s3937_s1 + $0x18] sm:$0xff] (!%p240_p9)  ;;  %s2393_s22 = sshll.u32 (!%p240_p9), %s267_s21, 3  ;;  %s2786_s9 = sshll.u32 (!%p240_p9), %s3263_s28, 7 }
  0x10   : > { %v283_v7 = vld [vmem:[%s3937_s1 + $0xc0] sm:$0xff] (!%p240_p9)  ;;  %v284_v13 = vld [vmem:[%s3937_s1 + $0xc8] sm:$0xff] (!%p240_p9)  ;;  %v2408_v18 = vld [vmem:[%s3937_s1 + $0x58] sm:$0xff] (!%p240_p9)  ;;  %v2415_v22 = vcombine.high (!%p240_p9), %v2405_v14, %v2407_v16  ;;  %v2414_v29 = vcombine.low (!%p240_p9), %v2405_v14, %v2407_v16  ;;  %s269_s13 = scalar_lea.vmem (!%p240_p9), [#allocation2], %s2393_s22  ;;  %s2317_s19 = scalar_lea.sflag (!%p240_p9), [#allocation3], %s267_s21 }
  0x11   : > { %v2400_v11 = vcombine.high (!%p240_p9), %v281_v6, %v283_v7  ;;  %351 = vmatprep.subr.bf16.mxu0 (!%p240_p9), %v2396_v3  ;;  %v2402_v15 = vcombine.high (!%p240_p9), %v282_v12, %v284_v13  ;;  %392 = vmatprep.subr.bf16.mxu1 (!%p240_p9), %v2398_v9  ;;  %v2399_v19 = vcombine.low (!%p240_p9), %v281_v6, %v283_v7  ;;  %v2409_v20 = vld [vmem:[%s3937_s1 + $0x90] sm:$0xff] (!%p240_p9)  ;;  %v2410_v26 = vld [vmem:[%s3937_s1 + $0x98] sm:$0xff] (!%p240_p9)  ;;  %v3005_v35 = vld [vmem:[%s3939_s3 + $0x140] sm:$0xff] (!%p240_p9)   ;;  %s2330_s14 = sshll.u32 (!%p240_p9), %s269_s13, 4  ;;  %s3895_s14 = int_to_ptr.vmem [resolvable:$true] %s2330_s14 }
  0x12   : > { %352 = vmatpush1.bf16.msra.mxu0 (!%p240_p9), %v2395_v5  ;;  %393 = vmatpush1.bf16.msra.mxu1 (!%p240_p9), %v2397_v10  ;;  %v2401_v21 = vcombine.low (!%p240_p9), %v282_v12, %v284_v13  ;;  %v2411_v23 = vld [vmem:[%s3937_s1 + $0xd0] sm:$0xff] (!%p240_p9)  ;;  %v2417_v25 = vcombine.high (!%p240_p9), %v2406_v17, %v2408_v18  ;;  %v2412_v28 = vld [vmem:[%s3937_s1 + $0xd8] sm:$0xff] (!%p240_p9)  ;;  %v2416_v30 = vcombine.low (!%p240_p9), %v2406_v17, %v2408_v18  ;;  %v3006_v36 = vld [vmem:[%s3939_s3 + $0x1c0] sm:$0xff] (!%p240_p9)   ;;  %v287_v5 = vlaneseq (!%p240_p9)  ;;  %s3136_s20 = scalar_lea.vmem (!%p240_p9), %s3895_s14, 128 }
  0x13   : > { %353 = vmatprep.subr.bf16.mxu0 (!%p240_p9), %v2400_v11  ;;  %394 = vmatprep.subr.bf16.mxu1 (!%p240_p9), %v2402_v15  ;;  %v2419_v31 = vcombine.high (!%p240_p9), %v2409_v20, %v2411_v23  ;;  %v2421_v32 = vcombine.high (!%p240_p9), %v2410_v26, %v2412_v28  ;;  %v2418_v33 = vcombine.low (!%p240_p9), %v2409_v20, %v2411_v23  ;;  %v3007_v37 = vld [vmem:[%s3939_s3 + $0x100] sm:$0xff] (!%p240_p9)   ;;  %v3009_v39 = vld [vmem:[%s3939_s3 + $0x148] sm:$0xff] (!%p240_p9)   ;;  %v3013_v43 = vld [vmem:[%s3939_s3 + $0x150] sm:$0xff] (!%p240_p9)   ;;  %p3137_p11 = scmp.ne.s32.totalorder (!%p240_p9), %s3895_s14, %s3136_s20 }
  0x14   : > { %v2420_v34 = vcombine.low (!%p240_p9), %v2410_v26, %v2412_v28  ;;  %v3008_v38 = vld [vmem:[%s3939_s3 + $0x180] sm:$0xff] (!%p240_p9)   ;;  %v3010_v40 = vld [vmem:[%s3939_s3 + $0x1c8] sm:$0xff] (!%p240_p9)   ;;  %v3014_v44 = vld [vmem:[%s3939_s3 + $0x1d0] sm:$0xff] (!%p240_p9)   ;;  %v288_v6 = vshrl.u32 (!%p240_p9), %v287_v5, 7 }
  0x15   : > { %s271_s15 = scalar_select %p270_p10, %s3263_s28, 1  ;;  %v3011_v41 = vld [vmem:[%s3939_s3 + $0x108] sm:$0xff]   ;;  %v3015_v45 = vld [vmem:[%s3939_s3 + $0x110] sm:$0xff]   ;;  %v3017_v47 = vld [vmem:[%s3939_s3 + $0x158] sm:$0xff]  }
  0x16   : > { %354 = vmatpush1.bf16.msra.mxu0 %v2399_v19  ;;  %395 = vmatpush1.bf16.msra.mxu1 %v2401_v21  ;;  %v3012_v42 = vld [vmem:[%s3939_s3 + $0x188] sm:$0xff]   ;;  %v3016_v46 = vld [vmem:[%s3939_s3 + $0x190] sm:$0xff]   ;;  %v3018_v48 = vld [vmem:[%s3939_s3 + $0x1d8] sm:$0xff]   ;;  %v3473_v11 = vsub.s32 1, %v288_v6  ;;  %v3475_v13 = vsub.s32 3, %v288_v6  ;;  %v3480_v17 = vsub.s32 0, %v288_v6  ;;  %p3138_p12 = pnand %p3137_p11, %p3280_p5 }
  0x17   : > { %s2394_s29 = sshll.u32 %s271_s15, 3  ;;  %577 = vmatprep.subr.bf16.mxu0 %v2415_v22  ;;  %618 = vmatprep.subr.bf16.mxu1 %v2417_v25  ;;  %v3019_v49 = vld [vmem:[%s3939_s3 + $0x118] sm:$0xff]   ;;  %v3021_v51 = vld [vmem:[%s3939_s3 + $0x160] sm:$0xff]   ;;  %v3025_v55 = vld [vmem:[%s3939_s3 + $0x168] sm:$0xff]   ;;  %v3482_v20 = vsub.s32 2, %v288_v6  ;;  %s3893_s15 = scalar_lea.hbm %s3943_s7, %s2786_s9 }
  0x18   : > { %s3338_s16 = scalar_lea.vmem %s3936_s0, %s2394_s29  ;;  %v3020_v50 = vld [vmem:[%s3939_s3 + $0x198] sm:$0xff]   ;;  %v3022_v52 = vld [vmem:[%s3939_s3 + $0x1e0] sm:$0xff]   ;;  %v3026_v56 = vld [vmem:[%s3939_s3 + $0x1e8] sm:$0xff]   ;;  %p3139_p13 = pneg %p3138_p12 }
  0x19   : > { %v275_v24 = vld [vmem:[%s3338_s16] sm:$0xff]  ;;  %v3027_v57 = vld [vmem:[%s3939_s3 + $0x128] sm:$0xff]   ;;  %v3029_v59 = vld [vmem:[%s3939_s3 + $0x170] sm:$0xff]   ;;  %s3201_s28 = smov [#allocation2]  }
  0x1a   : > { %v3347_v27 = vpack.c.bf16 %v275_v24, %v275_v24  ;;  %v3023_v53 = vld [vmem:[%s3939_s3 + $0x120] sm:$0xff]   ;;  %v3028_v58 = vld [vmem:[%s3939_s3 + $0x1a8] sm:$0xff]   ;;  %v3030_v60 = vld [vmem:[%s3939_s3 + $0x1f0] sm:$0xff]   ;;  %s3140_s22 = sshll.u32 %s3201_s28, 4  ;;  %s3141_s22 = int_to_ptr.vmem [resolvable:$false] %s3140_s22 }
  0x1b   : > { %v3024_v54 = vld [vmem:[%s3939_s3 + $0x1a0] sm:$0xff]   ;;  %v3031_v61 = vld [vmem:[%s3939_s3 + $0x130] sm:$0xff]   ;;  %v3033_v63 = vld [vmem:[%s3939_s3 + $0x178] sm:$0xff]   ;;  %p3143_p0 = scmp.lt.s32.totalorder %s3895_s14, %s3141_s22 }
  0x1c   : > { %2403 = vmatmul.mubr.msk.bf16.vlgmr.msra.gmra.mrb[0].mxu0 %vm347_vm0, %v3347_v27  ;;  %2404 = vmatmul.mubr.msk.bf16.vlgmr.msra.gmra.mrb[0].mxu1 %vm347_vm0, %v3347_v27  ;;  %v3032_v62 = vld [vmem:[%s3939_s3 + $0x1b0] sm:$0xff]   ;;  %v3034_v0 = vld [vmem:[%s3939_s3 + $0x1f8] sm:$0xff]   ;;  %v3037_v3 = vld [vmem:[%s3939_s3 + $0x40] sm:$0xff]  }
  0x1d   : > { %578 = vmatpush1.bf16.msra.mxu0 %v2414_v29  ;;  %619 = vmatpush1.bf16.msra.mxu1 %v2416_v30  ;;  %v3035_v1 = vld [vmem:[%s3939_s3 + $0x138] sm:$0xff]   ;;  %v3038_v4 = vld [vmem:[%s3939_s3 + $0xc0] sm:$0xff]  }
  0x1e   : > { %579 = vmatprep.subr.bf16.mxu0 %v2419_v31  ;;  %620 = vmatprep.subr.bf16.mxu1 %v2421_v32  ;;  %v3036_v2 = vld [vmem:[%s3939_s3 + $0x1b8] sm:$0xff]   ;;  %v3469_v9 = vld [vmem:[%s3938_s2] sm:$0xf]  ;;  %v2413_v16 = vld [vmem:[%s3938_s2 + $0x4] sm:$0xf] }
  0x1f   : > { %609 = vmatprep.mubr.bf16.mxu0 %v3200_v8  ;;  %650 = vmatprep.mubr.bf16.mxu1 %v3200_v8  ;;  %v294_v22 = vrot.slane %v3469_v9, %v3473_v11  ;;  %v520_v23 = vrot.slane %v2413_v16, %v3480_v17  ;;  %v302_v24 = vrot.slane %v3469_v9, %v3475_v13  ;;  %v3053_v5 = vld [vmem:[%s3939_s3 + $0x60] sm:$0xff]  }
  0x20   : > { %v528_v25 = vrot.slane %v2413_v16, %v3482_v20  ;;  %v524_v26 = vrot.slane %v2413_v16, %v3473_v11  ;;  %v532_v28 = vrot.slane %v2413_v16, %v3475_v13  ;;  %v3054_v6 = vld [vmem:[%s3939_s3 + $0xe0] sm:$0xff]   ;;  %v3058_v16 = vld [vmem:[%s3939_s3 + $0xe8] sm:$0xff]  }
  0x21   : > { %580 = vmatpush1.bf16.msra.mxu0 %v2418_v33  ;;  %621 = vmatpush1.bf16.msra.mxu1 %v2420_v34 }
  0x22   : > { %2789 = vmatprep.subr.bf16.mxu0 %v3005_v35  ;;  %2811 = vmatprep.subr.bf16.mxu1 %v3006_v36 }
  0x24   : > { %2422 = vmatmul.mubr.msk.bf16.vlgmr.msra.gmra.mrb[4].mxu0 %vm347_vm0, %v3347_v27  ;;  %2423 = vmatmul.mubr.msk.bf16.vlgmr.msra.gmra.mrb[4].mxu1 %vm347_vm0, %v3347_v27 }
  0x25   : > { %2790 = vmatpush3.bf16.msra.mxu0 %v3007_v37  ;;  %2812 = vmatpush3.bf16.msra.mxu1 %v3008_v38 }
  0x26   : > { %2791 = vmatprep.subr.bf16.mxu0 %v3009_v39  ;;  %2813 = vmatprep.subr.bf16.mxu1 %v3010_v40 }
  0x29   : > { %2792 = vmatpush3.bf16.msra.mxu0 %v3011_v41  ;;  %2814 = vmatpush3.bf16.msra.mxu1 %v3012_v42 }
  0x2a   : > { %2793 = vmatprep.subr.bf16.mxu0 %v3013_v43  ;;  %2815 = vmatprep.subr.bf16.mxu1 %v3014_v44 }
  0x2d   : > { %2794 = vmatpush3.bf16.msra.mxu0 %v3015_v45  ;;  %2816 = vmatpush3.bf16.msra.mxu1 %v3016_v46 }
  0x2e   : > { %2795 = vmatprep.subr.bf16.mxu0 %v3017_v47  ;;  %2817 = vmatprep.subr.bf16.mxu1 %v3018_v48 }
  0x31   : > { %2796 = vmatpush3.bf16.msra.mxu0 %v3019_v49  ;;  %2818 = vmatpush3.bf16.msra.mxu1 %v3020_v50  ;;  %v3039_v50 = vld [vmem:[%s3939_s3] sm:$0xff]  }
  0x32   : > { %2797 = vmatprep.subr.bf16.mxu0 %v3021_v51  ;;  %2819 = vmatprep.subr.bf16.mxu1 %v3022_v52 }
  0x35   : > { %2798 = vmatpush3.bf16.msra.mxu0 %v3023_v53  ;;  %2820 = vmatpush3.bf16.msra.mxu1 %v3024_v54  ;;  %v3040_v53 = vld [vmem:[%s3939_s3 + $0x80] sm:$0xff]  }
  0x36   : > { %2799 = vmatprep.subr.bf16.mxu0 %v3025_v55  ;;  %2821 = vmatprep.subr.bf16.mxu1 %v3026_v56  ;;  %v3041_v55 = vld [vmem:[%s3939_s3 + $0x48] sm:$0xff]  }
  0x39   : > { %2800 = vmatpush3.bf16.msra.mxu0 %v3027_v57  ;;  %2822 = vmatpush3.bf16.msra.mxu1 %v3028_v58  ;;  %v3042_v57 = vld [vmem:[%s3939_s3 + $0xc8] sm:$0xff]  }
  0x3a   : > { %2801 = vmatprep.subr.bf16.mxu0 %v3029_v59  ;;  %2823 = vmatprep.subr.bf16.mxu1 %v3030_v60  ;;  %v3043_v59 = vld [vmem:[%s3939_s3 + $0x8] sm:$0xff]  }
  0x3b   : > { %v3044_v60 = vld [vmem:[%s3939_s3 + $0x88] sm:$0xff]  }
  0x3d   : > { %2802 = vmatpush3.bf16.msra.mxu0 %v3031_v61  ;;  %2824 = vmatpush3.bf16.msra.mxu1 %v3032_v62  ;;  %v3045_v61 = vld [vmem:[%s3939_s3 + $0x50] sm:$0xff]  }
  0x3e   : > { %2803 = vmatprep.subr.bf16.mxu0 %v3033_v63  ;;  %2825 = vmatprep.subr.bf16.mxu1 %v3034_v0  ;;  %v3046_v62 = vld [vmem:[%s3939_s3 + $0xd0] sm:$0xff]  }
  0x3f   : > { %v3047_v63 = vld [vmem:[%s3939_s3 + $0x10] sm:$0xff]  }
  0x40   : > { %v3048_v0 = vld [vmem:[%s3939_s3 + $0x90] sm:$0xff]  }
  0x41   : > { %2804 = vmatpush3.bf16.msra.mxu0 %v3035_v1  ;;  %2826 = vmatpush3.bf16.msra.mxu1 %v3036_v2  ;;  %v3049_v1 = vld [vmem:[%s3939_s3 + $0x58] sm:$0xff]  }
  0x42   : > { %2833 = vmatprep.subr.bf16.mxu0 %v3037_v3  ;;  %2855 = vmatprep.subr.bf16.mxu1 %v3038_v4  ;;  %v3050_v2 = vld [vmem:[%s3939_s3 + $0xd8] sm:$0xff]  }
  0x43   : > { %v3051_v3 = vld [vmem:[%s3939_s3 + $0x18] sm:$0xff]  }
  0x44   : > { %v3052_v4 = vld [vmem:[%s3939_s3 + $0x98] sm:$0xff]  }
  0xef   : > { %v3464_v7 = vpop.f32.mrb[0].mxu0  ;;  %v3471_v10 = vpop.f32.mrb[0].mxu1 }
  0xf0   : > { %v387_v12 = vpop.f32.mrb[1].mxu0  ;;  %v428_v14 = vpop.f32.mrb[1].mxu1 }
  0xf1   : > { %v389_v15 = vpop.f32.mrb[2].mxu0  ;;  %v430_v18 = vpop.f32.mrb[2].mxu1  ;;  %v388_v30 = vadd.f32 %v387_v12, %v294_v22  ;;  %v429_v34 = vadd.f32 %v428_v14, %v302_v24  ;;  %v3055_v12 = vld [vmem:[%s3939_s3 + $0x20] sm:$0xff]   ;;  %v3061_v22 = vld [vmem:[%s3939_s3 + $0x70] sm:$0xff]  }
  0xf2   : > { %v390_v19 = vpop.f32.mrb[3].mxu0  ;;  %v431_v21 = vpop.f32.mrb[3].mxu1  ;;  %v3056_v14 = vld [vmem:[%s3939_s3 + $0xa0] sm:$0xff]   ;;  %v3057_v15 = vld [vmem:[%s3939_s3 + $0x68] sm:$0xff]   ;;  %v3062_v24 = vld [vmem:[%s3939_s3 + $0xf0] sm:$0xff]  }
  0xf3   : > { %v434_v46 = vmax.f32 %v388_v30, 0.0  ;;  %v436_v48 = vmax.f32 %v429_v34, 0.0  ;;  %v3059_v18 = vld [vmem:[%s3939_s3 + $0x28] sm:$0xff]   ;;  %v290_v19 = vrot.slane %v3469_v9, %v3480_v17  ;;  %v3066_v30 = vld [vmem:[%s3939_s3 + $0xf8] sm:$0xff]  }
  0xf4   : > { %v3060_v21 = vld [vmem:[%s3939_s3 + $0xa8] sm:$0xff]  }
  0xf5   : > { %v438_v56 = vpack.c.bf16 %v434_v46, %v434_v46  ;;  %v440_v58 = vpack.c.bf16 %v436_v48, %v436_v48 }
  0xf7   : > { %v611_v29 = vpop.f32.mrb[4].mxu0  ;;  %v652_v32 = vpop.f32.mrb[4].mxu1 }
  0xf8   : > { %v612_v31 = vadd.f32 %v611_v29, %v520_v23  ;;  %v613_v33 = vpop.f32.mrb[5].mxu0  ;;  %v653_v35 = vadd.f32 %v652_v32, %v528_v25  ;;  %v654_v37 = vpop.f32.mrb[5].mxu1  ;;  %v298_v23 = vrot.slane %v3469_v9, %v3482_v20  ;;  %v3063_v25 = vld [vmem:[%s3939_s3 + $0x30] sm:$0xff]   ;;  %v3065_v9 = vld [vmem:[%s3939_s3 + $0x78] sm:$0xff]   ;;  %v2553_v32 = vld [vmem:[%s3937_s1 + $0x28] sm:$0xff] }
  0xf9   : > { %v614_v36 = vadd.f32 %v613_v33, %v524_v26  ;;  %v615_v38 = vpop.f32.mrb[6].mxu0  ;;  %v655_v40 = vadd.f32 %v654_v37, %v532_v28  ;;  %v656_v41 = vpop.f32.mrb[6].mxu1  ;;  %v386_v26 = vadd.f32 %v3464_v7, %v290_v19  ;;  %v3064_v28 = vld [vmem:[%s3939_s3 + $0xb0] sm:$0xff]   ;;  %v2552_v7 = vld [vmem:[%s3937_s1 + $0x20] sm:$0xff]  ;;  %v3067_v33 = vld [vmem:[%s3939_s3 + $0x38] sm:$0xff]  }
  0xfa   : > { %v659_v39 = vmax.f32 %v612_v31, 0.0  ;;  %v616_v42 = vpop.f32.mrb[7].mxu0  ;;  %v661_v43 = vmax.f32 %v653_v35, 0.0  ;;  %v657_v45 = vpop.f32.mrb[7].mxu1  ;;  %v427_v29 = vadd.f32 %v3471_v10, %v298_v23  ;;  %v2554_v31 = vld [vmem:[%s3937_s1 + $0x60] sm:$0xff]  ;;  %v2555_v10 = vld [vmem:[%s3937_s1 + $0x68] sm:$0xff] }
  0xfb   : > { %v660_v44 = vmax.f32 %v614_v36, 0.0  ;;  %v662_v47 = vmax.f32 %v655_v40, 0.0  ;;  %v433_v34 = vmax.f32 %v386_v26, 0.0  ;;  %v3068_v35 = vld [vmem:[%s3939_s3 + $0xb8] sm:$0xff]   ;;  %v2562_v36 = vcombine.high %v2552_v7, %v2554_v31  ;;  %v2558_v40 = vld [vmem:[%s3937_s1 + $0xe0] sm:$0xff]  ;;  %v2557_v41 = vld [vmem:[%s3937_s1 + $0xa8] sm:$0xff] }
  0xfc   : > { %v663_v51 = vpack.c.bf16 %v659_v39, %v659_v39  ;;  %v665_v54 = vpack.c.bf16 %v661_v43, %v661_v43  ;;  %v435_v37 = vmax.f32 %v427_v29, 0.0  ;;  %v2564_v38 = vcombine.high %v2553_v32, %v2555_v10  ;;  %v2556_v39 = vld [vmem:[%s3937_s1 + $0xa0] sm:$0xff]  ;;  %v2559_v42 = vld [vmem:[%s3937_s1 + $0xe8] sm:$0xff]  ;;  %v3094_v19 = vld [vmem:[%s3939_s3 + $0x2f0] sm:$0xff]  }
  0xfd   : > { %v664_v49 = vpack.c.bf16 %v660_v44, %v660_v44  ;;  %v666_v52 = vpack.c.bf16 %v662_v47, %v662_v47  ;;  %v2561_v43 = vcombine.low %v2552_v7, %v2554_v31  ;;  %v437_v44 = vpack.c.bf16 %v433_v34, %v433_v34  ;;  %v3097_v23 = vld [vmem:[%s3939_s3 + $0x278] sm:$0xff]  }
  0xfe   : > { %v2563_v45 = vcombine.low %v2553_v32, %v2555_v10  ;;  %v2566_v46 = vcombine.high %v2556_v39, %v2558_v40  ;;  %v439_v47 = vpack.c.bf16 %v435_v37, %v435_v37  ;;  %v2568_v48 = vcombine.high %v2557_v41, %v2559_v42  ;;  %v3100_v26 = vld [vmem:[%s3939_s3 + $0x2b8] sm:$0xff]  }
  0xff   : > { %956 = vmatprep.mubr.bf16.mxu0 %v664_v49  ;;  %996 = vmatprep.mubr.bf16.mxu1 %v666_v52  ;;  %v2565_v49 = vcombine.low %v2556_v39, %v2558_v40  ;;  %v3070_v52 = vld [vmem:[%s3939_s3 + $0x2c0] sm:$0xff]   ;;  %v3727_v29 = vld [vmem:[%s3937_s1 + $0x38] sm:$0xff] }
 0x100   : > { %957 = vmatmul.mubr.bf16.vlgmr.msra.gmra.mrb[8].mxu0 %v663_v51  ;;  %997 = vmatmul.mubr.bf16.vlgmr.msra.gmra.mrb[8].mxu1 %v665_v54  ;;  %v3069_v51 = vld [vmem:[%s3939_s3 + $0x240] sm:$0xff]   ;;  %v3734_v7 = vld [vmem:[%s3937_s1 + $0x78] sm:$0xff] }
 0x101   : > { %2834 = vmatpush3.bf16.msra.mxu0 %v3039_v50  ;;  %2856 = vmatpush3.bf16.msra.mxu1 %v3040_v53  ;;  %v2567_v50 = vcombine.low %v2557_v41, %v2559_v42  ;;  %v3071_v53 = vld [vmem:[%s3939_s3 + $0x200] sm:$0xff]   ;;  %v2678_v32 = vcombine.low %v3727_v29, %v3734_v7  ;;  %v2679_v10 = vcombine.high %v3727_v29, %v3734_v7 }
 0x102   : > { %1228 = vmatprep.mubr.bf16.mxu0 %v438_v56  ;;  %1268 = vmatprep.mubr.bf16.mxu1 %v440_v58  ;;  %v3072_v54 = vld [vmem:[%s3939_s3 + $0x280] sm:$0xff]   ;;  %v3074_v56 = vld [vmem:[%s3939_s3 + $0x2c8] sm:$0xff]  }
 0x103   : > { %2835 = vmatprep.subr.bf16.mxu0 %v3041_v55  ;;  %2857 = vmatprep.subr.bf16.mxu1 %v3042_v57  ;;  %v3073_v55 = vld [vmem:[%s3939_s3 + $0x248] sm:$0xff]   ;;  %v3103_v29 = vld [vmem:[%s3939_s3 + $0x300] sm:$0xff]  }
 0x104   : > { %v3075_v57 = vld [vmem:[%s3939_s3 + $0x208] sm:$0xff]   ;;  %v3104_v7 = vld [vmem:[%s3939_s3 + $0x380] sm:$0xff]  }
 0x105   : > { %2836 = vmatpush3.bf16.msra.mxu0 %v3043_v59  ;;  %2858 = vmatpush3.bf16.msra.mxu1 %v3044_v60  ;;  %v3076_v58 = vld [vmem:[%s3939_s3 + $0x288] sm:$0xff]   ;;  %v3077_v59 = vld [vmem:[%s3939_s3 + $0x250] sm:$0xff]  }
 0x106   : > { %2837 = vmatprep.subr.bf16.mxu0 %v3045_v61  ;;  %2859 = vmatprep.subr.bf16.mxu1 %v3046_v62  ;;  %v3078_v60 = vld [vmem:[%s3939_s3 + $0x2d0] sm:$0xff]  }
 0x107   : > { %v3079_v61 = vld [vmem:[%s3939_s3 + $0x210] sm:$0xff]  }
 0x108   : > { %v3080_v62 = vld [vmem:[%s3939_s3 + $0x290] sm:$0xff]  }
 0x109   : > { %2838 = vmatpush3.bf16.msra.mxu0 %v3047_v63  ;;  %2860 = vmatpush3.bf16.msra.mxu1 %v3048_v0  ;;  %v3081_v63 = vld [vmem:[%s3939_s3 + $0x258] sm:$0xff]  }
 0x10a   : > { %2839 = vmatprep.subr.bf16.mxu0 %v3049_v1  ;;  %2861 = vmatprep.subr.bf16.mxu1 %v3050_v2  ;;  %v3082_v0 = vld [vmem:[%s3939_s3 + $0x2d8] sm:$0xff]  }
 0x10b   : > { %v3083_v1 = vld [vmem:[%s3939_s3 + $0x218] sm:$0xff]  }
 0x10c   : > { %v3084_v2 = vld [vmem:[%s3939_s3 + $0x298] sm:$0xff]  }
 0x10d   : > { %2840 = vmatpush3.bf16.msra.mxu0 %v3051_v3  ;;  %2862 = vmatpush3.bf16.msra.mxu1 %v3052_v4  ;;  %v3085_v3 = vld [vmem:[%s3939_s3 + $0x260] sm:$0xff]  }
 0x10e   : > { %2841 = vmatprep.subr.bf16.mxu0 %v3053_v5  ;;  %2863 = vmatprep.subr.bf16.mxu1 %v3054_v6  ;;  %v3086_v4 = vld [vmem:[%s3939_s3 + $0x2e0] sm:$0xff]  }
 0x10f   : > { %v3087_v5 = vld [vmem:[%s3939_s3 + $0x220] sm:$0xff]  }
 0x110   : > { %v3088_v6 = vld [vmem:[%s3939_s3 + $0x2a0] sm:$0xff]  }
 0x111   : > { %2842 = vmatpush3.bf16.msra.mxu0 %v3055_v12  ;;  %2864 = vmatpush3.bf16.msra.mxu1 %v3056_v14  ;;  %v3089_v12 = vld [vmem:[%s3939_s3 + $0x268] sm:$0xff]  }
 0x112   : > { %2843 = vmatprep.subr.bf16.mxu0 %v3057_v15  ;;  %2865 = vmatprep.subr.bf16.mxu1 %v3058_v16  ;;  %v3090_v14 = vld [vmem:[%s3939_s3 + $0x2e8] sm:$0xff]  }
 0x113   : > { %v3091_v15 = vld [vmem:[%s3939_s3 + $0x228] sm:$0xff]  }
 0x114   : > { %v3092_v16 = vld [vmem:[%s3939_s3 + $0x2a8] sm:$0xff]  }
 0x115   : > { %2844 = vmatpush3.bf16.msra.mxu0 %v3059_v18  ;;  %2866 = vmatpush3.bf16.msra.mxu1 %v3060_v21  ;;  %v3093_v18 = vld [vmem:[%s3939_s3 + $0x270] sm:$0xff]  }
 0x116   : > { %2845 = vmatprep.subr.bf16.mxu0 %v3061_v22  ;;  %2867 = vmatprep.subr.bf16.mxu1 %v3062_v24  ;;  %v3095_v21 = vld [vmem:[%s3939_s3 + $0x230] sm:$0xff]   ;;  %v3098_v24 = vld [vmem:[%s3939_s3 + $0x2f8] sm:$0xff]  }
 0x117   : > { %v3096_v22 = vld [vmem:[%s3939_s3 + $0x2b0] sm:$0xff]  }
 0x119   : > { %2846 = vmatpush3.bf16.msra.mxu0 %v3063_v25  ;;  %2868 = vmatpush3.bf16.msra.mxu1 %v3064_v28  ;;  %v3099_v25 = vld [vmem:[%s3939_s3 + $0x238] sm:$0xff]   ;;  %v3717_v28 = vld [vmem:[%s3937_s1 + $0x30] sm:$0xff] }
 0x11a   : > { %2847 = vmatprep.subr.bf16.mxu0 %v3065_v9  ;;  %2869 = vmatprep.subr.bf16.mxu1 %v3066_v30  ;;  %v3722_v9 = vld [vmem:[%s3937_s1 + $0x70] sm:$0xff] }
 0x11b   : > { %v2677_v30 = vcombine.high %v3717_v28, %v3722_v9  ;;  %v2676_v31 = vcombine.low %v3717_v28, %v3722_v9 }
 0x11d   : > { %2848 = vmatpush3.bf16.msra.mxu0 %v3067_v33  ;;  %2870 = vmatpush3.bf16.msra.mxu1 %v3068_v35 }
 0x11e   : > { %1348 = vmatprep.subr.bf16.mxu0 %v2562_v36  ;;  %1389 = vmatprep.subr.bf16.mxu1 %v2564_v38 }
 0x120   : > { %1229 = vmatmul.mubr.bf16.vlgmr.msra.gmra.mrb[12].mxu0 %v437_v44  ;;  %1269 = vmatmul.mubr.bf16.vlgmr.msra.gmra.mrb[12].mxu1 %v439_v47 }
 0x121   : > { %1349 = vmatpush1.bf16.msra.mxu0 %v2561_v43  ;;  %1390 = vmatpush1.bf16.msra.mxu1 %v2563_v45 }
 0x122   : > { %1350 = vmatprep.subr.bf16.mxu0 %v2566_v46  ;;  %1391 = vmatprep.subr.bf16.mxu1 %v2568_v48 }
 0x123   : > { %1380 = vmatprep.mubr.bf16.mxu0 %v3200_v8  ;;  %1421 = vmatprep.mubr.bf16.mxu1 %v3200_v8 }
 0x125   : > { %1351 = vmatpush1.bf16.msra.mxu0 %v2565_v49  ;;  %1392 = vmatpush1.bf16.msra.mxu1 %v2567_v50  ;;  %v2560_v50 = vld [vmem:[%s3938_s2 + $0x8] sm:$0xf] }
 0x126   : > { %2877 = vmatprep.subr.bf16.mxu0 %v3069_v51  ;;  %2899 = vmatprep.subr.bf16.mxu1 %v3070_v52 }
 0x128   : > { %2569 = vmatmul.mubr.msk.bf16.vlgmr.msra.gmra.mrb[16].mxu0 %vm347_vm0, %v3347_v27  ;;  %2570 = vmatmul.mubr.msk.bf16.vlgmr.msra.gmra.mrb[16].mxu1 %vm347_vm0, %v3347_v27 }
 0x129   : > { %2878 = vmatpush3.bf16.msra.mxu0 %v3071_v53  ;;  %2900 = vmatpush3.bf16.msra.mxu1 %v3072_v54 }
 0x12a   : > { %2879 = vmatprep.subr.bf16.mxu0 %v3073_v55  ;;  %2901 = vmatprep.subr.bf16.mxu1 %v3074_v56  ;;  %v1291_v56 = vrot.slane %v2560_v50, %v3480_v17 }
 0x12d   : > { %2880 = vmatpush3.bf16.msra.mxu0 %v3075_v57  ;;  %2902 = vmatpush3.bf16.msra.mxu1 %v3076_v58  ;;  %v1299_v58 = vrot.slane %v2560_v50, %v3482_v20 }
 0x12e   : > { %2881 = vmatprep.subr.bf16.mxu0 %v3077_v59  ;;  %2903 = vmatprep.subr.bf16.mxu1 %v3078_v60  ;;  %v1295_v59 = vrot.slane %v2560_v50, %v3473_v11  ;;  %v1303_v60 = vrot.slane %v2560_v50, %v3475_v13  ;;  %v3122_v50 = vld [vmem:[%s3939_s3 + $0x3e8] sm:$0xff]  }
 0x131   : > { %2882 = vmatpush3.bf16.msra.mxu0 %v3079_v61  ;;  %2904 = vmatpush3.bf16.msra.mxu1 %v3080_v62 }
 0x132   : > { %2883 = vmatprep.subr.bf16.mxu0 %v3081_v63  ;;  %2905 = vmatprep.subr.bf16.mxu1 %v3082_v0 }
 0x135   : > { %2884 = vmatpush3.bf16.msra.mxu0 %v3083_v1  ;;  %2906 = vmatpush3.bf16.msra.mxu1 %v3084_v2 }
 0x136   : > { %2885 = vmatprep.subr.bf16.mxu0 %v3085_v3  ;;  %2907 = vmatprep.subr.bf16.mxu1 %v3086_v4 }
 0x139   : > { %2886 = vmatpush3.bf16.msra.mxu0 %v3087_v5  ;;  %2908 = vmatpush3.bf16.msra.mxu1 %v3088_v6 }
 0x13a   : > { %2887 = vmatprep.subr.bf16.mxu0 %v3089_v12  ;;  %2909 = vmatprep.subr.bf16.mxu1 %v3090_v14 }
 0x13d   : > { %2888 = vmatpush3.bf16.msra.mxu0 %v3091_v15  ;;  %2910 = vmatpush3.bf16.msra.mxu1 %v3092_v16 }
 0x13e   : > { %2889 = vmatprep.subr.bf16.mxu0 %v3093_v18  ;;  %2911 = vmatprep.subr.bf16.mxu1 %v3094_v19  ;;  %v2671_v19 = vld [vmem:[%s3937_s1 + $0xb0] sm:$0xff] }
 0x141   : > { %2890 = vmatpush3.bf16.msra.mxu0 %v3095_v21  ;;  %2912 = vmatpush3.bf16.msra.mxu1 %v3096_v22  ;;  %v2673_v21 = vld [vmem:[%s3937_s1 + $0xf0] sm:$0xff] }
 0x142   : > { %2891 = vmatprep.subr.bf16.mxu0 %v3097_v23  ;;  %2913 = vmatprep.subr.bf16.mxu1 %v3098_v24  ;;  %v2672_v23 = vld [vmem:[%s3937_s1 + $0xb8] sm:$0xff]  ;;  %v2681_v9 = vcombine.high %v2671_v19, %v2673_v21 }
 0x143   : > { %v2674_v24 = vld [vmem:[%s3937_s1 + $0xf8] sm:$0xff] }
 0x145   : > { %2892 = vmatpush3.bf16.msra.mxu0 %v3099_v25  ;;  %2914 = vmatpush3.bf16.msra.mxu1 %v3100_v26 }
 0x146   : > { %1848 = vmatprep.subr.bf16.mxu0 %v2677_v30  ;;  %1889 = vmatprep.subr.bf16.mxu1 %v2679_v10  ;;  %v2683_v10 = vcombine.high %v2672_v23, %v2674_v24 }
 0x1d3   : > { %v2805_v33 = vpop.f32.mrb[8].mxu0  ;;  %v2827_v34 = vpop.f32.mrb[8].mxu1 }
 0x1d4   : > { %v2806_v35 = vpop.f32.mrb[9].mxu0  ;;  %v2828_v37 = vpop.f32.mrb[9].mxu1 }
 0x1d5   : > { %v2807_v36 = vadd.f32 %v2806_v35, %v2805_v33  ;;  %v2808_v38 = vpop.f32.mrb[10].mxu0  ;;  %v2829_v39 = vadd.f32 %v2828_v37, %v2827_v34  ;;  %v2830_v40 = vpop.f32.mrb[10].mxu1  ;;  %v2680_v33 = vcombine.low %v2671_v19, %v2673_v21  ;;  %v2682_v34 = vcombine.low %v2672_v23, %v2674_v24  ;;  %v3101_v35 = vld [vmem:[%s3939_s3 + $0x340] sm:$0xff]   ;;  %v3108_v37 = vld [vmem:[%s3939_s3 + $0x388] sm:$0xff]  }
 0x1d6   : > { %v2809_v41 = vpop.f32.mrb[11].mxu0  ;;  %v2831_v42 = vpop.f32.mrb[11].mxu1  ;;  %v3109_v38 = vld [vmem:[%s3939_s3 + $0x350] sm:$0xff]  }
 0x1d7   : > { %v999_v43 = vadd.f32 %v2829_v39, %v2807_v36  ;;  %v3102_v36 = vld [vmem:[%s3939_s3 + $0x3c0] sm:$0xff]   ;;  %v3111_v39 = vld [vmem:[%s3939_s3 + $0x310] sm:$0xff]   ;;  %v3113_v41 = vld [vmem:[%s3939_s3 + $0x358] sm:$0xff]  }
 0x1d8   : > { %v3112_v40 = vld [vmem:[%s3939_s3 + $0x390] sm:$0xff]   ;;  %v3114_v42 = vld [vmem:[%s3939_s3 + $0x3d8] sm:$0xff]  }
 0x1f3   : > { %v2849_v44 = vpop.f32.mrb[12].mxu0  ;;  %v2871_v45 = vpop.f32.mrb[12].mxu1 }
 0x1f4   : > { %v2850_v46 = vpop.f32.mrb[13].mxu0  ;;  %v2872_v48 = vpop.f32.mrb[13].mxu1 }
 0x1f5   : > { %v2851_v47 = vadd.f32 %v2850_v46, %v2849_v44  ;;  %v2852_v49 = vpop.f32.mrb[14].mxu0  ;;  %v2873_v51 = vadd.f32 %v2872_v48, %v2871_v45  ;;  %v2874_v52 = vpop.f32.mrb[14].mxu1  ;;  %v3116_v44 = vld [vmem:[%s3939_s3 + $0x398] sm:$0xff]   ;;  %v3117_v45 = vld [vmem:[%s3939_s3 + $0x360] sm:$0xff]  }
 0x1f6   : > { %v2853_v53 = vpop.f32.mrb[15].mxu0  ;;  %v2875_v55 = vpop.f32.mrb[15].mxu1  ;;  %v3118_v46 = vld [vmem:[%s3939_s3 + $0x3e0] sm:$0xff]   ;;  %v3121_v49 = vld [vmem:[%s3939_s3 + $0x368] sm:$0xff]  }
 0x1f7   : > { %v1231_v54 = vadd.f32 %v2851_v47, %v999_v43  ;;  %v3115_v43 = vld [vmem:[%s3939_s3 + $0x318] sm:$0xff]   ;;  %v3119_v47 = vld [vmem:[%s3939_s3 + $0x320] sm:$0xff]   ;;  %v3124_v52 = vld [vmem:[%s3939_s3 + $0x3a8] sm:$0xff]  }
 0x1f8   : > { %v3120_v48 = vld [vmem:[%s3939_s3 + $0x3a0] sm:$0xff]   ;;  %v3125_v53 = vld [vmem:[%s3939_s3 + $0x370] sm:$0xff]  }
 0x1f9   : > { %v3746_v57 = vadd.f32 %v2873_v51, %v1231_v54  ;;  %v3123_v51 = vld [vmem:[%s3939_s3 + $0x328] sm:$0xff]   ;;  %v3126_v54 = vld [vmem:[%s3939_s3 + $0x3f0] sm:$0xff]  }
 0x1fa   : > { %v3127_v55 = vld [vmem:[%s3939_s3 + $0x330] sm:$0xff]  }
 0x1fb   : > { %v1382_v61 = vpop.f32.mrb[16].mxu0  ;;  %v1423_v63 = vpop.f32.mrb[16].mxu1 }
 0x1fc   : > { %v1383_v62 = vadd.f32 %v1382_v61, %v1291_v56  ;;  %v1384_v0 = vpop.f32.mrb[17].mxu0  ;;  %v1424_v1 = vadd.f32 %v1423_v63, %v1299_v58  ;;  %v1425_v3 = vpop.f32.mrb[17].mxu1  ;;  %v3128_v56 = vld [vmem:[%s3939_s3 + $0x3b0] sm:$0xff]   ;;  %v3129_v58 = vld [vmem:[%s3939_s3 + $0x378] sm:$0xff]  }
 0x1fd   : > { %v1385_v2 = vadd.f32 %v1384_v0, %v1295_v59  ;;  %v1386_v4 = vpop.f32.mrb[18].mxu0  ;;  %v1426_v6 = vadd.f32 %v1425_v3, %v1303_v60  ;;  %v1427_v12 = vpop.f32.mrb[18].mxu1  ;;  %v3130_v59 = vld [vmem:[%s3939_s3 + $0x3f8] sm:$0xff]  }
 0x1fe   : > { %v1430_v5 = vmax.f32 %v1383_v62, 0.0  ;;  %v1387_v14 = vpop.f32.mrb[19].mxu0  ;;  %v1432_v15 = vmax.f32 %v1424_v1, 0.0  ;;  %v1428_v18 = vpop.f32.mrb[19].mxu1  ;;  %v3131_v60 = vld [vmem:[%s3939_s3 + $0x338] sm:$0xff]  }
 0x1ff   : > { %v1431_v16 = vmax.f32 %v1385_v2, 0.0  ;;  %v1433_v22 = vmax.f32 %v1426_v6, 0.0  ;;  %v3132_v61 = vld [vmem:[%s3939_s3 + $0x3b8] sm:$0xff]   ;;  %v2675_v4 = vld [vmem:[%s3938_s2 + $0xc] sm:$0xf] }
 0x200   : > { %v1434_v26 = vpack.c.bf16 %v1430_v5, %v1430_v5  ;;  %v1436_v30 = vpack.c.bf16 %v1432_v15, %v1432_v15  ;;  %v1799_v18 = vrot.slane %v2675_v4, %v3482_v20  ;;  %v1795_v19 = vrot.slane %v2675_v4, %v3473_v11 }
 0x201   : > { %v1435_v25 = vpack.c.bf16 %v1431_v16, %v1431_v16  ;;  %v1437_v28 = vpack.c.bf16 %v1433_v22, %v1433_v22  ;;  %v1791_v16 = vrot.slane %v2675_v4, %v3480_v17  ;;  %v1803_v22 = vrot.slane %v2675_v4, %v3475_v13 }
 0x203   : > { %1727 = vmatprep.mubr.bf16.mxu0 %v1435_v25  ;;  %1767 = vmatprep.mubr.bf16.mxu1 %v1437_v28 }
 0x204   : > { %1728 = vmatmul.mubr.bf16.vlgmr.msra.gmra.mrb[20].mxu0 %v1434_v26  ;;  %1768 = vmatmul.mubr.bf16.vlgmr.msra.gmra.mrb[20].mxu1 %v1436_v30 }
 0x205   : > { %1849 = vmatpush1.bf16.msra.mxu0 %v2676_v31  ;;  %1890 = vmatpush1.bf16.msra.mxu1 %v2678_v32  ;;  %v3105_v31 = vld [vmem:[%s3939_s3 + $0x348] sm:$0xff]  }
 0x206   : > { %1850 = vmatprep.subr.bf16.mxu0 %v2681_v9  ;;  %1891 = vmatprep.subr.bf16.mxu1 %v2683_v10  ;;  %v3107_v32 = vld [vmem:[%s3939_s3 + $0x308] sm:$0xff]  }
 0x207   : > { %1880 = vmatprep.mubr.bf16.mxu0 %v3200_v8  ;;  %1921 = vmatprep.mubr.bf16.mxu1 %v3200_v8  ;;  %v3106_v8 = vld [vmem:[%s3939_s3 + $0x3c8] sm:$0xff]  }
 0x209   : > { %1851 = vmatpush1.bf16.msra.mxu0 %v2680_v33  ;;  %1892 = vmatpush1.bf16.msra.mxu1 %v2682_v34 }
 0x20a   : > { %2921 = vmatprep.subr.bf16.mxu0 %v3101_v35  ;;  %2943 = vmatprep.subr.bf16.mxu1 %v3102_v36 }
 0x20c   : > { %2684 = vmatmul.mubr.msk.bf16.vlgmr.msra.gmra.mrb[24].mxu0 %vm347_vm0, %v3347_v27  ;;  %2685 = vmatmul.mubr.msk.bf16.vlgmr.msra.gmra.mrb[24].mxu1 %vm347_vm0, %v3347_v27  ;;  %v3110_v27 = vld [vmem:[%s3939_s3 + $0x3d0] sm:$0xff]  }
 0x20d   : > { %2922 = vmatpush3.bf16.msra.mxu0 %v3103_v29  ;;  %2944 = vmatpush3.bf16.msra.mxu1 %v3104_v7 }
 0x20e   : > { %2923 = vmatprep.subr.bf16.mxu0 %v3105_v31  ;;  %2945 = vmatprep.subr.bf16.mxu1 %v3106_v8 }
 0x211   : > { %2924 = vmatpush3.bf16.msra.mxu0 %v3107_v32  ;;  %2946 = vmatpush3.bf16.msra.mxu1 %v3108_v37 }
 0x212   : > { %2925 = vmatprep.subr.bf16.mxu0 %v3109_v38  ;;  %2947 = vmatprep.subr.bf16.mxu1 %v3110_v27 }
 0x215   : > { %2926 = vmatpush3.bf16.msra.mxu0 %v3111_v39  ;;  %2948 = vmatpush3.bf16.msra.mxu1 %v3112_v40 }
 0x216   : > { %2927 = vmatprep.subr.bf16.mxu0 %v3113_v41  ;;  %2949 = vmatprep.subr.bf16.mxu1 %v3114_v42 }
 0x219   : > { %2928 = vmatpush3.bf16.msra.mxu0 %v3115_v43  ;;  %2950 = vmatpush3.bf16.msra.mxu1 %v3116_v44 }
 0x21a   : > { %2929 = vmatprep.subr.bf16.mxu0 %v3117_v45  ;;  %2951 = vmatprep.subr.bf16.mxu1 %v3118_v46  ;;  %v2782_v45 = vld [vmem:[%s3940_s4] ss:$0 sm:$0xff] }
 0x21d   : > { %2930 = vmatpush3.bf16.msra.mxu0 %v3119_v47  ;;  %2952 = vmatpush3.bf16.msra.mxu1 %v3120_v48  ;;  %v3135_v48 = vld [vmem:[%s3338_s16] sm:$0xff]  ;;  %s3142_s16 = scalar_lea.vmem %s3141_s22, 256 }
 0x21e   : > { %2931 = vmatprep.subr.bf16.mxu0 %v3121_v49  ;;  %2953 = vmatprep.subr.bf16.mxu1 %v3122_v50  ;;  %p3144_p1 = scmp.lt.s32.totalorder %s3142_s16, %s3136_s20 }
 0x220   : > { %p3145_p2 = por %p3144_p1, %p3143_p0 }
 0x221   : > { %2932 = vmatpush3.bf16.msra.mxu0 %v3123_v51  ;;  %2954 = vmatpush3.bf16.msra.mxu1 %v3124_v52 }
 0x222   : > { %2933 = vmatprep.subr.bf16.mxu0 %v3125_v53  ;;  %2955 = vmatprep.subr.bf16.mxu1 %v3126_v54  ;;  %p3146_p3 = pnand %p3145_p2, %p3139_p13 }
 0x225   : > { %2934 = vmatpush3.bf16.msra.mxu0 %v3127_v55  ;;  %2956 = vmatpush3.bf16.msra.mxu1 %v3128_v56 }
 0x226   : > { %2935 = vmatprep.subr.bf16.mxu0 %v3129_v58  ;;  %2957 = vmatprep.subr.bf16.mxu1 %v3130_v59 }
 0x229   : > { %2936 = vmatpush3.bf16.msra.mxu0 %v3131_v60  ;;  %2958 = vmatpush3.bf16.msra.mxu1 %v3132_v61  ;;  %v2783_v61 = vld [vmem:[%s3941_s5] ss:$0 sm:$0xff] }
 0x2d7   : > { %v2893_v62 = vpop.f32.mrb[20].mxu0  ;;  %v2915_v63 = vpop.f32.mrb[20].mxu1 }
 0x2d8   : > { %v2894_v0 = vpop.f32.mrb[21].mxu0  ;;  %v2916_v2 = vpop.f32.mrb[21].mxu1 }
 0x2d9   : > { %v2895_v1 = vadd.f32 %v2894_v0, %v2893_v62  ;;  %v2896_v3 = vpop.f32.mrb[22].mxu0  ;;  %v2917_v5 = vadd.f32 %v2916_v2, %v2915_v63  ;;  %v2918_v6 = vpop.f32.mrb[22].mxu1  ;;  %v2784_v63 = vld [vmem:[%s3942_s6] ss:$0 sm:$0xff] }
 0x2da   : > { %v2897_v12 = vpop.f32.mrb[23].mxu0  ;;  %v2919_v14 = vpop.f32.mrb[23].mxu1 }
 0x2db   : > { %v1770_v15 = vadd.f32 %v2917_v5, %v2895_v1 }
 0x2dd   : > { %v1775_v21 = vadd.f32 %v1770_v15, %v3746_v57 }
 0x2df   : > { %v1882_v23 = vpop.f32.mrb[24].mxu0  ;;  %v1923_v25 = vpop.f32.mrb[24].mxu1 }
 0x2e0   : > { %v1883_v24 = vadd.f32 %v1882_v23, %v1791_v16  ;;  %v1884_v26 = vpop.f32.mrb[25].mxu0  ;;  %v1924_v28 = vadd.f32 %v1923_v25, %v1799_v18  ;;  %v1925_v30 = vpop.f32.mrb[25].mxu1 }
 0x2e1   : > { %v1885_v9 = vadd.f32 %v1884_v26, %v1795_v19  ;;  %v1886_v10 = vpop.f32.mrb[26].mxu0  ;;  %v1926_v34 = vadd.f32 %v1925_v30, %v1803_v22  ;;  %v1927_v35 = vpop.f32.mrb[26].mxu1 }
 0x2e2   : > { %v1930_v33 = vmax.f32 %v1883_v24, 0.0  ;;  %v1887_v17 = vpop.f32.mrb[27].mxu0  ;;  %v1932_v36 = vmax.f32 %v1924_v28, 0.0  ;;  %v1928_v29 = vpop.f32.mrb[27].mxu1 }
 0x2e3   : > { %v1931_v20 = vmax.f32 %v1885_v9, 0.0  ;;  %v1933_v11 = vmax.f32 %v1926_v34, 0.0 }
 0x2e4   : > { %v1934_v57 = vpack.c.bf16 %v1930_v33, %v1930_v33  ;;  %v1936_v13 = vpack.c.bf16 %v1932_v36, %v1932_v36 }
 0x2e5   : > { %v1935_v7 = vpack.c.bf16 %v1931_v20, %v1931_v20  ;;  %v1937_v31 = vpack.c.bf16 %v1933_v11, %v1933_v11 }
 0x2e7   : > { %2227 = vmatprep.mubr.bf16.mxu0 %v1935_v7  ;;  %2267 = vmatprep.mubr.bf16.mxu1 %v1937_v31 }
 0x2e8   : > { %2228 = vmatmul.mubr.bf16.vlgmr.msra.gmra.mrb[28].mxu0 %v1934_v57  ;;  %2268 = vmatmul.mubr.bf16.vlgmr.msra.gmra.mrb[28].mxu1 %v1936_v13 }
 0x3bb   : > { %v2937_v8 = vpop.f32.mrb[28].mxu0  ;;  %v2959_v32 = vpop.f32.mrb[28].mxu1 }
 0x3bc   : > { %v2938_v37 = vpop.f32.mrb[29].mxu0  ;;  %v2960_v27 = vpop.f32.mrb[29].mxu1 }
 0x3bd   : > { %v2939_v38 = vadd.f32 %v2938_v37, %v2937_v8  ;;  %v2940_v39 = vpop.f32.mrb[30].mxu0  ;;  %v2961_v40 = vadd.f32 %v2960_v27, %v2959_v32  ;;  %v2962_v41 = vpop.f32.mrb[30].mxu1 }
 0x3be   : > { %v2941_v42 = vpop.f32.mrb[31].mxu0  ;;  %v2963_v43 = vpop.f32.mrb[31].mxu1 }
 0x3bf   : > { %v2270_v44 = vadd.f32 %v2961_v40, %v2939_v38 }
 0x3c1   : > { %v2275_v46 = vadd.f32 %v2270_v44, %v1775_v21 }
 0x3c3   : > { %v2283_v47 = vadd.f32 %v2782_v45, %v2275_v46 }
 0x3c5   : > { %v2284_v49 = vadd.f32 %v3135_v48, %v2283_v47 }
 0x3c7   : > { %v2285_v50 = vsel %vm347_vm0, %v2284_v49, 0.0 }
 0x3c8   : > { %2286 = vadd.xlane.f32.xlu0 %v2285_v50 }
 0x455   : > { %v2287_v51 = vpop.xlane.xlu0 %2286 }
 0x456   : > { %v2289_v52 = vmul.f32 0.03125, %v2287_v51 }
 0x458   : > { %v2290_v53 = vsub.f32 %v2284_v49, %v2289_v52 }
 0x45a   : > { %v2291_v54 = vmul.f32 %v2290_v53, %v2290_v53 }
 0x45c   : > { %v2292_v55 = vsel %vm347_vm0, %v2291_v54, 0.0 }
 0x45d   : > { %2293 = vadd.xlane.f32.xlu0 %v2292_v55 }
 0x4ea   : > { %v2294_v56 = vpop.xlane.xlu0 %2293 }
 0x4eb   : > { %v2295_v58 = vmul.f32 0.03125, %v2294_v56 }
 0x4ed   : > { %v2296_v59 = vadd.f32 1e-05, %v2295_v58 }
 0x4ef   : > { %3133 = vrsqrt.f32 %v2296_v59 }
 0x4f9   : > { %v3134_v60 = vpop.eup %3133 }
 0x4fa   : > { %v2298_v62 = vmul.f32 %v3134_v60, %v2290_v53 }
 0x4fc   : > { %v2306_v0 = vmul.f32 %v2783_v61, %v2298_v62 }
 0x4fe   : > { %v2314_v1 = vadd.f32 %v2784_v63, %v2306_v0 }
 0x500   : > { %2315 = vst.msk [vmem:[%s269_s13] sm:$0xff] %vm347_vm0, %v2314_v1 }
 0x501   : > { %3149 = shalt.err (!%p3146_p3)
}
 0x502   : > { %s3150_s21 = scalar_lea.hbm %s3893_s15, 128  ;;  %s3154_s8 = scalar_lea.hbm %s3943_s7, 256 }
 0x503   : > { %p3151_p4 = scmp.ne.s32.totalorder %s3893_s15, %s3150_s21  ;;  %p3155_p9 = scmp.lt.u32.totalorder %s3893_s15, %s3943_s7 }
 0x504   : > { %p3156_p10 = scmp.lt.u32.totalorder %s3154_s8, %s3150_s21  ;;  %p3158_p12 = scmp.lt.u32.totalorder %s3150_s21, %s3893_s15 }
 0x505   : > { %p3152_p7 = pnand %p3151_p4, %p3280_p5 }
 0x506   : > { %p3157_p11 = por %p3156_p10, %p3155_p9 }
 0x507   : > { %p3153_p8 = pneg %p3152_p7 }
 0x508   : > { %p3159_p13 = por %p3158_p12, %p3157_p11 }
 0x50a   : > { %p3160_p0 = pnand %p3159_p13, %p3153_p8 }
 0x50c   : > { %3163 = shalt.err (!%p3160_p0)
}
 0x50d   : > { %2965 = dma.vmem_to_hbm [thread:$0]  (%p3280_p5), %s3895_s14, 128, %s3893_s15, %s2317_s19  }
 0x50e PF: > { %p2971_p1 = scmp.ge.s32.totalorder %s3198_s27, 2  ;;  %s2342_s17 = sand.u32 1, %s3186_s24  }
 0x50f   : > { %s2343_s18 = scalar_lea.sflag [#allocation3], %s2342_s17 }
 0x510   : > { %p2968_p2 = pnand %p2971_p1, %p3284_p6 }
 0x512   : > { %3181 = dma.done.wait (!%p2968_p2), %s2343_s18, 128  }
 0x513   : > { %3183 = vsyncadd (!%p2968_p2), %s2343_s18, 4294967168  ;;  %p17_p3 = scmp.ge.s32.totalorder %s3267_s30, 4   ;;  %s3946_s24 = smov %s3190_s25 }
 0x514   : > { %s3947_s25 = smov %s3194_s26  ;;  %s3948_s26 = smov %s3278_s10 }
 0x515   : > { %s3949_s27 = smov %s3267_s30  ;;  %19 = sbr.rel (!%p17_p3) target bundleno = 3 (0x3), region = 92 }
 0x51c   :  { %2348 = vsyncpa [#allocation3], 1 }
 0x51d   :  { %2350 = vsyncpa [#allocation3 + $0x1], 1 }

</bundles_post_ra>
